<compile_context>
chip_gen: v6e
topology: v6e:2x2x1
jax: 0.10.0
libtpu: 0.0.40
codegen_flags: <defaults>
</compile_context>

<pallas_src>
import jax
import jax.numpy as jnp
from jax.experimental import pallas as pl
from jax.experimental.pallas import tpu as pltpu


def _conv_twice_kernel(x_ref, ntop_ref, nbot_ref, w1_ref, b1_ref, w2_ref, b2_ref, o_ref):
    """Fused conv3x3+ReLU -> conv3x3+ReLU on a block of B images packed along the rows.

    x_ref   : (B*H, W*Cin)          lane-fused input, B images stacked along the sublane axis
    ntop_ref: (B*H, 1)              1.0 where a row above exists inside the same image, else 0
    nbot_ref: (B*H, 1)              1.0 where a row below exists inside the same image, else 0
    w1_ref  : (3, W*Cin,  W*Cmid)   banded weights, one matrix per vertical tap dy
    b1_ref  : (1, W*Cmid)           bias tiled across W
    w2_ref  : (3, W*Cmid, W*Cout)
    b2_ref  : (1, W*Cout)
    o_ref   : (B*H, W*Cout)
    """
    rows = x_ref.shape[0]
    not_top = ntop_ref[...]          # (rows, 1), lane-broadcast in the multiplies below
    not_bot = nbot_ref[...]

    def conv3x3_relu(act, w_ref, b_ref):
        # Vertical taps in vregs: circular sublane roll (XLU) + 0/1 boundary-row mask (VPU)
        # == vertical SAME padding.  Horizontal taps + channel mixing live inside the banded
        # weight matrices, so the whole 3x3 conv is three tall lane-dense MXU matmuls.
        up = pltpu.roll(act, shift=1, axis=0) * not_top            # act[r-1], 0 at image top
        down = pltpu.roll(act, shift=rows - 1, axis=0) * not_bot   # act[r+1] (shift -1), 0 at bottom
        acc = jnp.dot(up, w_ref[0], preferred_element_type=jnp.float32)
        acc += jnp.dot(act, w_ref[1], preferred_element_type=jnp.float32)
        acc += jnp.dot(down, w_ref[2], preferred_element_type=jnp.float32)
        return jnp.maximum(acc + b_ref[...], 0.0)                  # bias + ReLU, lane-dense

    y1 = conv3x3_relu(x_ref[...], w1_ref, b1_ref)                  # intermediate stays in vregs
    o_ref[...] = conv3x3_relu(y1, w2_ref, b2_ref).astype(o_ref.dtype)


def _band_weights(w_hwio, W):
    """(3,3,Cin,Cout) HWIO weights -> (3, W*Cin, W*Cout) banded matrices.

    mats[dy][w_in*Cin+ci, w_out*Cout+co] = w_hwio[dy, dx, ci, co] with dx = w_in - w_out + 1,
    zero when dx falls outside the 3x3 kernel (this also implements horizontal SAME padding).
    One-time, wrapper-side cost; gives the kernel a contiguous VMEM-resident MXU RHS.
    """
    kh, kw, cin, cout = w_hwio.shape
    mats = []
    for dy in range(kh):
        m = jnp.zeros((W * cin, W * cout), w_hwio.dtype)
        for dx in range(kw):
            shift = jnp.eye(W, k=1 - dx, dtype=w_hwio.dtype)   # selects w_in = w_out + dx - 1
            m = m + jnp.kron(shift, w_hwio[dy, dx])
        mats.append(m)
    return jnp.stack(mats)


def prepare_params(params, W):
    """One-time layout prep (run at parameter-load time, NOT per forward call — review #8)."""
    w1, b1, w2, b2 = params
    cmid, cout = w1.shape[0], w2.shape[0]
    w1b = _band_weights(jnp.transpose(w1, (2, 3, 1, 0)), W)   # OIHW -> HWIO -> banded
    w2b = _band_weights(jnp.transpose(w2, (2, 3, 1, 0)), W)
    b1t = jnp.tile(b1, W).reshape(1, W * cmid)
    b2t = jnp.tile(b2, W).reshape(1, W * cout)
    return w1b, b1t, w2b, b2t


def _pick_images_per_block(n, h, target_rows=256, max_rows=2048):
    """Batch-packing factor B (review #1): N % B == 0, B*H sublane-aligned, and B*H reaching
    ~target_rows of MXU M when the batch allows it, while keeping blocks VMEM-friendly."""
    cands = [b for b in range(1, n + 1)
             if n % b == 0 and (b * h) % 8 == 0 and b * h <= max_rows]
    if not cands:
        return n            # fall back to one full-array block
    for b in cands:
        if b * h >= target_rows:
            return b
    return cands[-1]


@jax.jit
def conv_twice(x_nchw, prepped):
    """Forward pass of ConvTwice. x_nchw: (N, Cin, H, W) -> (N, Cout, H, W)."""
    w1b, b1t, w2b, b2t = prepped
    N, Cin, H, W = x_nchw.shape
    w_cin = W * Cin
    w_cmid = b1t.shape[-1]
    w_cout = b2t.shape[-1]
    Cout = w_cout // W

    # Lane-fused activation layout: NCHW -> NHWC -> (N*H, W*Cin). The reshape is free; the
    # transpose is a small XLA op fused into this jit alongside the kernel (review #8).
    x = jnp.transpose(x_nchw, (0, 2, 3, 1)).reshape(N * H, w_cin)

    B = _pick_images_per_block(N, H)
    rows = B * H

    # 0/1 image-boundary row masks (shared by both conv stages inside the kernel).
    r = jnp.arange(rows)
    not_top = ((r % H) != 0).astype(x.dtype).reshape(rows, 1)
    not_bot = ((r % H) != (H - 1)).astype(x.dtype).reshape(rows, 1)

    out = pl.pallas_call(
        _conv_twice_kernel,
        out_shape=jax.ShapeDtypeStruct((N * H, w_cout), x_nchw.dtype),
        grid_spec=pltpu.PrefetchScalarGridSpec(
            num_scalar_prefetch=0,
            grid=(N // B,),
            in_specs=[
                pl.BlockSpec((rows, w_cin), lambda n: (n, 0)),
                # Constant index_maps: masks / weights / biases stay VMEM-resident across steps.
                pl.BlockSpec((rows, 1), lambda n: (0, 0)),
                pl.BlockSpec((rows, 1), lambda n: (0, 0)),
                pl.BlockSpec((3, w_cin, w_cmid), lambda n: (0, 0, 0)),
                pl.BlockSpec((1, w_cmid), lambda n: (0, 0)),
                pl.BlockSpec((3, w_cmid, w_cout), lambda n: (0, 0, 0)),
                pl.BlockSpec((1, w_cout), lambda n: (0, 0)),
            ],
            out_specs=pl.BlockSpec((rows, w_cout), lambda n: (n, 0)),
        ),
        compiler_params=pltpu.CompilerParams(dimension_semantics=("parallel",)),
    )(x, not_top, not_bot, w1b, b1t, w2b, b2t)

    # Free contiguous reshape back to NHWC, then transpose to NCHW to match PyTorch.
    return jnp.transpose(out.reshape(N, H, W, Cout), (0, 3, 1, 2))


def _reference(x_nchw, params):
    """Pure-JAX reference (lax conv) matching PyTorch semantics."""
    w1, b1, w2, b2 = params

    def conv(x, w, b):
        y = jax.lax.conv_general_dilated(
            x, w, window_strides=(1, 1), padding="SAME",
            dimension_numbers=("NCHW", "OIHW", "NCHW"))
        return jax.nn.relu(y + b[None, :, None, None])

    return conv(conv(x_nchw, w1, b1), w2, b2)


if __name__ == "__main__":
    key = jax.random.PRNGKey(0)
    N, Cin, Cout, H, W = 2, 4, 8, 16, 16

    k_x, k_w1, k_b1, k_w2, k_b2 = jax.random.split(key, 5)
    x = jax.random.normal(k_x, (N, Cin, H, W), dtype=jnp.float32)
    # Deterministic synthetic parameters (shapes follow nn.Conv2d(in, out, 3, padding=1)).
    w1 = 0.1 * jax.random.normal(k_w1, (Cout, Cin, 3, 3), dtype=jnp.float32)
    b1 = 0.1 * jax.random.normal(k_b1, (Cout,), dtype=jnp.float32)
    w2 = 0.1 * jax.random.normal(k_w2, (Cout, Cout, 3, 3), dtype=jnp.float32)
    b2 = 0.1 * jax.random.normal(k_b2, (Cout,), dtype=jnp.float32)
    params = (w1, b1, w2, b2)

    prepped = prepare_params(params, W)            # one-time banded-weight / bias layout prep
    out = jax.block_until_ready(conv_twice(x, prepped))
    ref = jax.block_until_ready(_reference(x, params))

    assert out.shape == (N, Cout, H, W), out.shape
    assert jnp.allclose(out, ref, atol=1e-4, rtol=1e-4), float(jnp.abs(out - ref).max())
    print("KERNEL_OK")
</pallas_src>

<mosaic_0001>
module attributes {stable_mosaic.version = 11 : i64} {
  func.func @_conv_twice_kernel(%arg0: i32, %arg1: memref<32x64xf32, #tpu.memory_space<vmem>>, %arg2: memref<32x1xf32, #tpu.memory_space<vmem>>, %arg3: memref<32x1xf32, #tpu.memory_space<vmem>>, %arg4: memref<3x64x128xf32, #tpu.memory_space<vmem>>, %arg5: memref<1x128xf32, #tpu.memory_space<vmem>>, %arg6: memref<3x128x128xf32, #tpu.memory_space<vmem>>, %arg7: memref<1x128xf32, #tpu.memory_space<vmem>>, %arg8: memref<32x128xf32, #tpu.memory_space<vmem>>) attributes {dimension_semantics = [#tpu.dimension_semantics<parallel>], iteration_bounds = array<i64: 1>, scalar_prefetch = 0 : i64, scratch_operands = 0 : i64, tpu.core_type = #tpu.core_type<tc>, window_params = [{transform_indices = @transform_0, window_bounds = array<i64: 32, 64>}, {pipeline_mode = #tpu.pipeline_mode<synchronous>, transform_indices = @transform_1, window_bounds = array<i64: 32, 1>}, {pipeline_mode = #tpu.pipeline_mode<synchronous>, transform_indices = @transform_2, window_bounds = array<i64: 32, 1>}, {pipeline_mode = #tpu.pipeline_mode<synchronous>, transform_indices = @transform_3, window_bounds = array<i64: 3, 64, 128>}, {pipeline_mode = #tpu.pipeline_mode<synchronous>, transform_indices = @transform_4, window_bounds = array<i64: 1, 128>}, {pipeline_mode = #tpu.pipeline_mode<synchronous>, transform_indices = @transform_5, window_bounds = array<i64: 3, 128, 128>}, {pipeline_mode = #tpu.pipeline_mode<synchronous>, transform_indices = @transform_6, window_bounds = array<i64: 1, 128>}, {transform_indices = @transform_7, window_bounds = array<i64: 32, 128>}]} {
    %c0 = arith.constant 0 : index
    %c0_0 = arith.constant 0 : index
    %0 = vector.load %arg2[%c0, %c0_0] : memref<32x1xf32, #tpu.memory_space<vmem>>, vector<32x1xf32>
    %c0_1 = arith.constant 0 : index
    %c0_2 = arith.constant 0 : index
    %1 = vector.load %arg3[%c0_1, %c0_2] : memref<32x1xf32, #tpu.memory_space<vmem>>, vector<32x1xf32>
    %c0_3 = arith.constant 0 : index
    %c0_4 = arith.constant 0 : index
    %2 = vector.load %arg1[%c0_3, %c0_4] : memref<32x64xf32, #tpu.memory_space<vmem>>, vector<32x64xf32>
    %c1_i32 = arith.constant 1 : i32
    %3 = tpu.dynamic_rotate %2 by %c1_i32 dim 0 : vector<32x64xf32>, i32 -> vector<32x64xf32>
    %4 = vector.broadcast %0 : vector<32x1xf32> to vector<32x64xf32>
    %5 = arith.mulf %3, %4 : vector<32x64xf32>
    %c31_i32 = arith.constant 31 : i32
    %6 = tpu.dynamic_rotate %2 by %c31_i32 dim 0 : vector<32x64xf32>, i32 -> vector<32x64xf32>
    %7 = vector.broadcast %1 : vector<32x1xf32> to vector<32x64xf32>
    %8 = arith.mulf %6, %7 : vector<32x64xf32>
    %c0_5 = arith.constant 0 : index
    %c0_6 = arith.constant 0 : index
    %c0_7 = arith.constant 0 : index
    %9 = vector.load %arg4[%c0_5, %c0_6, %c0_7] : memref<3x64x128xf32, #tpu.memory_space<vmem>>, vector<1x64x128xf32>
    %10 = vector.shape_cast %9 : vector<1x64x128xf32> to vector<64x128xf32>
    %cst = arith.constant dense<0.000000e+00> : vector<32x128xf32>
    %11 = tpu.matmul %5, %10, %cst {dimension_numbers = #tpu.dot_dimension_numbers<[1], [0], [0], [1], [0, 0, 1, 1], [], []>} : vector<32x64xf32>, vector<64x128xf32>, vector<32x128xf32> -> vector<32x128xf32>
    %c1 = arith.constant 1 : index
    %c0_8 = arith.constant 0 : index
    %c0_9 = arith.constant 0 : index
    %12 = vector.load %arg4[%c1, %c0_8, %c0_9] : memref<3x64x128xf32, #tpu.memory_space<vmem>>, vector<1x64x128xf32>
    %13 = vector.shape_cast %12 : vector<1x64x128xf32> to vector<64x128xf32>
    %cst_10 = arith.constant dense<0.000000e+00> : vector<32x128xf32>
    %14 = tpu.matmul %2, %13, %cst_10 {dimension_numbers = #tpu.dot_dimension_numbers<[1], [0], [0], [1], [0, 0, 1, 1], [], []>} : vector<32x64xf32>, vector<64x128xf32>, vector<32x128xf32> -> vector<32x128xf32>
    %15 = arith.addf %11, %14 : vector<32x128xf32>
    %c2 = arith.constant 2 : index
    %c0_11 = arith.constant 0 : index
    %c0_12 = arith.constant 0 : index
    %16 = vector.load %arg4[%c2, %c0_11, %c0_12] : memref<3x64x128xf32, #tpu.memory_space<vmem>>, vector<1x64x128xf32>
    %17 = vector.shape_cast %16 : vector<1x64x128xf32> to vector<64x128xf32>
    %cst_13 = arith.constant dense<0.000000e+00> : vector<32x128xf32>
    %18 = tpu.matmul %8, %17, %cst_13 {dimension_numbers = #tpu.dot_dimension_numbers<[1], [0], [0], [1], [0, 0, 1, 1], [], []>} : vector<32x64xf32>, vector<64x128xf32>, vector<32x128xf32> -> vector<32x128xf32>
    %19 = arith.addf %15, %18 : vector<32x128xf32>
    %c0_14 = arith.constant 0 : index
    %c0_15 = arith.constant 0 : index
    %20 = vector.load %arg5[%c0_14, %c0_15] : memref<1x128xf32, #tpu.memory_space<vmem>>, vector<1x128xf32>
    %21 = vector.broadcast %20 : vector<1x128xf32> to vector<32x128xf32>
    %22 = arith.addf %19, %21 : vector<32x128xf32>
    %cst_16 = arith.constant 0.000000e+00 : f32
    %23 = vector.broadcast %cst_16 : f32 to vector<32x128xf32>
    %24 = arith.maximumf %22, %23 : vector<32x128xf32>
    %c1_i32_17 = arith.constant 1 : i32
    %25 = tpu.dynamic_rotate %24 by %c1_i32_17 dim 0 : vector<32x128xf32>, i32 -> vector<32x128xf32>
    %26 = vector.broadcast %0 : vector<32x1xf32> to vector<32x128xf32>
    %27 = arith.mulf %25, %26 : vector<32x128xf32>
    %c31_i32_18 = arith.constant 31 : i32
    %28 = tpu.dynamic_rotate %24 by %c31_i32_18 dim 0 : vector<32x128xf32>, i32 -> vector<32x128xf32>
    %29 = vector.broadcast %1 : vector<32x1xf32> to vector<32x128xf32>
    %30 = arith.mulf %28, %29 : vector<32x128xf32>
    %c0_19 = arith.constant 0 : index
    %c0_20 = arith.constant 0 : index
    %c0_21 = arith.constant 0 : index
    %31 = vector.load %arg6[%c0_19, %c0_20, %c0_21] : memref<3x128x128xf32, #tpu.memory_space<vmem>>, vector<1x128x128xf32>
    %32 = vector.shape_cast %31 : vector<1x128x128xf32> to vector<128x128xf32>
    %cst_22 = arith.constant dense<0.000000e+00> : vector<32x128xf32>
    %33 = tpu.matmul %27, %32, %cst_22 {dimension_numbers = #tpu.dot_dimension_numbers<[1], [0], [0], [1], [0, 0, 1, 1], [], []>} : vector<32x128xf32>, vector<128x128xf32>, vector<32x128xf32> -> vector<32x128xf32>
    %c1_23 = arith.constant 1 : index
    %c0_24 = arith.constant 0 : index
    %c0_25 = arith.constant 0 : index
    %34 = vector.load %arg6[%c1_23, %c0_24, %c0_25] : memref<3x128x128xf32, #tpu.memory_space<vmem>>, vector<1x128x128xf32>
    %35 = vector.shape_cast %34 : vector<1x128x128xf32> to vector<128x128xf32>
    %cst_26 = arith.constant dense<0.000000e+00> : vector<32x128xf32>
    %36 = tpu.matmul %24, %35, %cst_26 {dimension_numbers = #tpu.dot_dimension_numbers<[1], [0], [0], [1], [0, 0, 1, 1], [], []>} : vector<32x128xf32>, vector<128x128xf32>, vector<32x128xf32> -> vector<32x128xf32>
    %37 = arith.addf %33, %36 : vector<32x128xf32>
    %c2_27 = arith.constant 2 : index
    %c0_28 = arith.constant 0 : index
    %c0_29 = arith.constant 0 : index
    %38 = vector.load %arg6[%c2_27, %c0_28, %c0_29] : memref<3x128x128xf32, #tpu.memory_space<vmem>>, vector<1x128x128xf32>
    %39 = vector.shape_cast %38 : vector<1x128x128xf32> to vector<128x128xf32>
    %cst_30 = arith.constant dense<0.000000e+00> : vector<32x128xf32>
    %40 = tpu.matmul %30, %39, %cst_30 {dimension_numbers = #tpu.dot_dimension_numbers<[1], [0], [0], [1], [0, 0, 1, 1], [], []>} : vector<32x128xf32>, vector<128x128xf32>, vector<32x128xf32> -> vector<32x128xf32>
    %41 = arith.addf %37, %40 : vector<32x128xf32>
    %c0_31 = arith.constant 0 : index
    %c0_32 = arith.constant 0 : index
    %42 = vector.load %arg7[%c0_31, %c0_32] : memref<1x128xf32, #tpu.memory_space<vmem>>, vector<1x128xf32>
    %43 = vector.broadcast %42 : vector<1x128xf32> to vector<32x128xf32>
    %44 = arith.addf %41, %43 : vector<32x128xf32>
    %cst_33 = arith.constant 0.000000e+00 : f32
    %45 = vector.broadcast %cst_33 : f32 to vector<32x128xf32>
    %46 = arith.maximumf %44, %45 : vector<32x128xf32>
    %c0_34 = arith.constant 0 : index
    %c0_35 = arith.constant 0 : index
    %47 = vector.load %arg8[%c0_34, %c0_35] : memref<32x128xf32, #tpu.memory_space<vmem>>, vector<32x128xf32>
    tpu.vector_store %arg8[%c0_34, %c0_35], %46 {strides = array<i32>} : memref<32x128xf32, #tpu.memory_space<vmem>>, vector<32x128xf32>,
    return
  }
  func.func @transform_0(%arg0: i32) -> (i32, i32) {
    %c0_i32 = arith.constant 0 : i32
    %c0_i32_0 = arith.constant 0 : i32
    return %arg0, %c0_i32 : i32, i32
  }
  func.func @transform_1(%arg0: i32) -> (i32, i32) {
    %c0_i32 = arith.constant 0 : i32
    %c0_i32_0 = arith.constant 0 : i32
    %c0_i32_1 = arith.constant 0 : i32
    return %c0_i32, %c0_i32_0 : i32, i32
  }
  func.func @transform_2(%arg0: i32) -> (i32, i32) {
    %c0_i32 = arith.constant 0 : i32
    %c0_i32_0 = arith.constant 0 : i32
    %c0_i32_1 = arith.constant 0 : i32
    return %c0_i32, %c0_i32_0 : i32, i32
  }
  func.func @transform_3(%arg0: i32) -> (i32, i32, i32) {
    %c0_i32 = arith.constant 0 : i32
    %c0_i32_0 = arith.constant 0 : i32
    %c0_i32_1 = arith.constant 0 : i32
    %c0_i32_2 = arith.constant 0 : i32
    return %c0_i32, %c0_i32_0, %c0_i32_1 : i32, i32, i32
  }
  func.func @transform_4(%arg0: i32) -> (i32, i32) {
    %c0_i32 = arith.constant 0 : i32
    %c0_i32_0 = arith.constant 0 : i32
    %c0_i32_1 = arith.constant 0 : i32
    return %c0_i32, %c0_i32_0 : i32, i32
  }
  func.func @transform_5(%arg0: i32) -> (i32, i32, i32) {
    %c0_i32 = arith.constant 0 : i32
    %c0_i32_0 = arith.constant 0 : i32
    %c0_i32_1 = arith.constant 0 : i32
    %c0_i32_2 = arith.constant 0 : i32
    return %c0_i32, %c0_i32_0, %c0_i32_1 : i32, i32, i32
  }
  func.func @transform_6(%arg0: i32) -> (i32, i32) {
    %c0_i32 = arith.constant 0 : i32
    %c0_i32_0 = arith.constant 0 : i32
    %c0_i32_1 = arith.constant 0 : i32
    return %c0_i32, %c0_i32_0 : i32, i32
  }
  func.func @transform_7(%arg0: i32) -> (i32, i32) {
    %c0_i32 = arith.constant 0 : i32
    %c0_i32_0 = arith.constant 0 : i32
    return %arg0, %c0_i32 : i32, i32
  }
}

</mosaic_0001>

<bundles_post_ra>
// kernel: conv_twice.1
= control target key start
LH: loop header
LB: loop body
LE: loop exit
PB: predicated region body
PF: predicated region fallthrough
CT: control target
= control target key end

     0   :  { %v1140_v0 = vmov 0   ;;  %v42_v3 = vlaneseq  ;;  %vm123_vm0 = vcmask 523264   ;;  %s1583_s2 = inlined_call_operand.vmem [shape: f32[32,1], index: 2, kind: input, shape index: {}]   ;;  %s1584_s1 = inlined_call_operand.vmem [shape: f32[32,1], index: 1, kind: input, shape index: {}]   ;;  %s1585_s3 = inlined_call_operand.vmem [shape: f32[3,64,128], index: 3, kind: input, shape index: {}]   ;;  %s1586_s0 = inlined_call_operand.vmem [shape: f32[32,64], index: 0, kind: input, shape index: {}]   ;;  %s1587_s5 = inlined_call_operand.vmem [shape: f32[3,128,128], index: 5, kind: input, shape index: {}]   ;;  %s1588_s4 = inlined_call_operand.vmem [shape: f32[1,128], index: 4, kind: input, shape index: {}]   ;;  %s1589_s6 = inlined_call_operand.vmem [shape: f32[1,128], index: 6, kind: input, shape index: {}]   ;;  %s1590_s7 = inlined_call_operand.vmem [shape: f32[32,128], index: 7, kind: output, shape index: {}]  }
   0x1   :  { %1139 = vset.pattern.permute.xlu1 %v1140_v0  ;;  %1138 = vset.pattern.permute.xlu0 %v1140_v0  ;;  %v30_v1 = vld [vmem:[%s1583_s2] sm:$0xff]  ;;  %v31_v4 = vld [vmem:[%s1583_s2 + $0x8] sm:$0xff]  ;;  %v806_v6 = vld [vmem:[%s1585_s3 + $0x78] sm:$0xff] }
   0x2   :  { %v26_v2 = vld [vmem:[%s1584_s1] sm:$0xff]  ;;  %84 = vperm.xlu1 %1139, %v30_v1   ;;  %v27_v5 = vld [vmem:[%s1584_s1 + $0x8] sm:$0xff]  ;;  %957 = vmatprep.subr.mxu0 %v806_v6  ;;  %v805_v7 = vld [vmem:[%s1585_s3 + $0x70] sm:$0xff]  ;;  %v1199_v8 = vshrl.u32 %v42_v3, 7 }
   0x3   :  { %51 = vperm.xlu0 %1138, %v26_v2   ;;  %958 = vmatpush3.msra.mxu0 %v806_v6  ;;  %v804_v9 = vld [vmem:[%s1585_s3 + $0x68] sm:$0xff]  ;;  %v34_v10 = vld [vmem:[%s1586_s0] sm:$0xff]  ;;  %v113_v11 = vld [vmem:[%s1585_s3 + $0x38] sm:$0xff] }
   0x4   :  { %v29_v12 = vld [vmem:[%s1584_s1 + $0x18] sm:$0xff]  ;;  %v28_v13 = vld [vmem:[%s1584_s1 + $0x10] sm:$0xff]  ;;  %959 = vmatprep.subr.mxu0 %v805_v7  ;;  %v73_v14 = vrot.slane %v34_v10, 1  ;;  %973 = vmatprep.mubr.msk.f32.mxu0 %vm123_vm0, %v34_v10  ;;  %v1220_v15 = vld [vmem:[%s1586_s0 + $0x8] sm:$0xff]  ;;  %vm77_vm1 = vcmp.lt.s32.totalorder %v1199_v8, 7  ;;  %v38_v16 = vrot.slane %v34_v10, 7 }
   0x5   :  { %960 = vmatpush3.msra.mxu0 %v805_v7  ;;  %979 = vmatprep.subr.mxu1 %v113_v11  ;;  %v39_v17 = vrot.slane %v1220_v15, 7  ;;  %v74_v18 = vrot.slane %v1220_v15, 1  ;;  %v112_v19 = vld [vmem:[%s1585_s3 + $0x30] sm:$0xff]  ;;  %v803_v20 = vld [vmem:[%s1585_s3 + $0x60] sm:$0xff]  ;;  %vm44_vm2 = vcmp.lt.s32.totalorder %v1199_v8, 1  ;;  %v33_v21 = vld [vmem:[%s1583_s2 + $0x18] sm:$0xff] }
   0x6   :  { %89 = vperm.xlu1 %1139, %v31_v4   ;;  %961 = vmatprep.subr.mxu0 %v804_v9  ;;  %v111_v22 = vld [vmem:[%s1585_s3 + $0x28] sm:$0xff]  ;;  %v32_v25 = vld [vmem:[%s1583_s2 + $0x10] sm:$0xff]  ;;  %v37_v27 = vld [vmem:[%s1586_s0 + $0x18] sm:$0xff] }
   0x7   :  { %56 = vperm.xlu0 %1138, %v27_v5   ;;  %980 = vmatpush3.msra.mxu1 %v113_v11  ;;  %v1240_v23 = vsel %vm77_vm1, %v73_v14, %v74_v18  ;;  %v1244_v24 = vsel %vm44_vm2, %v38_v16, %v39_v17  ;;  %v36_v26 = vld [vmem:[%s1586_s0 + $0x10] sm:$0xff]  ;;  %v802_v28 = vld [vmem:[%s1585_s3 + $0x58] sm:$0xff]  ;;  %v41_v31 = vrot.slane %v37_v27, 7  ;;  %v76_v32 = vrot.slane %v37_v27, 1  ;;  %v110_v33 = vld [vmem:[%s1585_s3 + $0x20] sm:$0xff] }
   0x8   :  { %962 = vmatpush3.msra.mxu0 %v804_v9  ;;  %981 = vmatprep.subr.mxu1 %v112_v19  ;;  %v40_v29 = vrot.slane %v36_v26, 7  ;;  %v75_v30 = vrot.slane %v36_v26, 1  ;;  %v801_v34 = vld [vmem:[%s1585_s3 + $0x50] sm:$0xff]  ;;  %v109_v38 = vld [vmem:[%s1585_s3 + $0x18] sm:$0xff]  ;;  %v800_v42 = vld [vmem:[%s1585_s3 + $0x48] sm:$0xff] }
   0x9   :  { %963 = vmatprep.subr.mxu0 %v803_v20  ;;  %982 = vmatpush3.msra.mxu1 %v112_v19  ;;  %v1266_v35 = vsel %vm44_vm2, %v41_v31, %v38_v16  ;;  %v1285_v40 = vsel %vm77_vm1, %v76_v32, %v73_v14  ;;  %v108_v43 = vld [vmem:[%s1585_s3 + $0x10] sm:$0xff]  ;;  %v799_v44 = vld [vmem:[%s1585_s3 + $0x40] sm:$0xff]  ;;  %v107_v45 = vld [vmem:[%s1585_s3 + $0x8] sm:$0xff] }
   0xa   :  { %66 = vperm.xlu1 %1139, %v29_v12   ;;  %964 = vmatpush3.msra.mxu0 %v803_v20  ;;  %v1270_v36 = vsel %vm77_vm1, %v74_v18, %v75_v30  ;;  %v1274_v37 = vsel %vm44_vm2, %v40_v29, %v41_v31  ;;  %v1281_v39 = vsel %vm44_vm2, %v39_v17, %v40_v29  ;;  %v822_v46 = vld [vmem:[%s1585_s3 + $0xb8] sm:$0xff]  ;;  %v821_v47 = vld [vmem:[%s1585_s3 + $0xb0] sm:$0xff]  ;;  %v106_v48 = vld [vmem:[%s1585_s3] sm:$0xff] }
   0xb   :  { %61 = vperm.xlu0 %1138, %v28_v13   ;;  %983 = vmatprep.subr.mxu1 %v111_v22  ;;  %v1289_v41 = vsel %vm77_vm1, %v75_v30, %v76_v32  ;;  %v820_v49 = vld [vmem:[%s1585_s3 + $0xa8] sm:$0xff]  ;;  %v819_v50 = vld [vmem:[%s1585_s3 + $0xa0] sm:$0xff]  ;;  %v843_v51 = vld [vmem:[%s1587_s5 + $0xf8] sm:$0xff] }
   0xc   :  { %965 = vmatprep.subr.mxu0 %v802_v28  ;;  %984 = vmatpush3.msra.mxu1 %v111_v22  ;;  %v818_v52 = vld [vmem:[%s1585_s3 + $0x98] sm:$0xff]  ;;  %v817_v53 = vld [vmem:[%s1585_s3 + $0x90] sm:$0xff]  ;;  %v816_v54 = vld [vmem:[%s1585_s3 + $0x88] sm:$0xff] }
   0xd   :  { %966 = vmatpush3.msra.mxu0 %v802_v28  ;;  %985 = vmatprep.subr.mxu1 %v110_v33  ;;  %v815_v55 = vld [vmem:[%s1585_s3 + $0x80] sm:$0xff]  ;;  %v482_v56 = vld [vmem:[%s1587_s5 + $0x78] sm:$0xff]  ;;  %v842_v1 = vld [vmem:[%s1587_s5 + $0xf0] sm:$0xff] }
   0xe   :  { %99 = vperm.xlu1 %1139, %v33_v21   ;;  %967 = vmatprep.subr.mxu0 %v801_v34  ;;  %v481_v2 = vld [vmem:[%s1587_s5 + $0x70] sm:$0xff]  ;;  %v841_v5 = vld [vmem:[%s1587_s5 + $0xe8] sm:$0xff]  ;;  %v840_v10 = vld [vmem:[%s1587_s5 + $0xe0] sm:$0xff] }
   0xf   :  { %94 = vperm.xlu0 %1138, %v32_v25   ;;  %986 = vmatpush3.msra.mxu1 %v110_v33  ;;  %v480_v9 = vld [vmem:[%s1587_s5 + $0x68] sm:$0xff]  ;;  %v479_v11 = vld [vmem:[%s1587_s5 + $0x60] sm:$0xff]  ;;  %v839_v16 = vld [vmem:[%s1587_s5 + $0xd8] sm:$0xff] }
  0x10   :  { %968 = vmatpush3.msra.mxu0 %v801_v34  ;;  %987 = vmatprep.subr.mxu1 %v109_v38  ;;  %v838_v17 = vld [vmem:[%s1587_s5 + $0xd0] sm:$0xff]  ;;  %v478_v18 = vld [vmem:[%s1587_s5 + $0x58] sm:$0xff]  ;;  %v837_v19 = vld [vmem:[%s1587_s5 + $0xc8] sm:$0xff] }
  0x11   :  { %969 = vmatprep.subr.mxu0 %v800_v42  ;;  %988 = vmatpush3.msra.mxu1 %v109_v38  ;;  %v836_v20 = vld [vmem:[%s1587_s5 + $0xc0] sm:$0xff]  ;;  %v835_v21 = vld [vmem:[%s1587_s5 + $0xb8] sm:$0xff]  ;;  %v834_v22 = vld [vmem:[%s1587_s5 + $0xb0] sm:$0xff] }
  0x12   :  { %970 = vmatpush3.msra.mxu0 %v800_v42  ;;  %989 = vmatprep.subr.mxu1 %v108_v43  ;;  %v832_v25 = vld [vmem:[%s1587_s5 + $0xa0] sm:$0xff]  ;;  %v830_v29 = vld [vmem:[%s1587_s5 + $0x90] sm:$0xff]  ;;  %v474_v30 = vld [vmem:[%s1587_s5 + $0x38] sm:$0xff] }
  0x13   :  { %971 = vmatprep.subr.mxu0 %v799_v44  ;;  %990 = vmatpush3.msra.mxu1 %v108_v43  ;;  %v475_v28 = vld [vmem:[%s1587_s5 + $0x40] sm:$0xff]  ;;  %v829_v31 = vld [vmem:[%s1587_s5 + $0x88] sm:$0xff]  ;;  %v473_v32 = vld [vmem:[%s1587_s5 + $0x30] sm:$0xff] }
  0x14   :  { %972 = vmatpush3.msra.mxu0 %v799_v44  ;;  %991 = vmatprep.subr.mxu1 %v107_v45  ;;  %v828_v33 = vld [vmem:[%s1587_s5 + $0x80] sm:$0xff]  ;;  %v472_v34 = vld [vmem:[%s1587_s5 + $0x28] sm:$0xff]  ;;  %v469_v38 = vld [vmem:[%s1587_s5 + $0x10] sm:$0xff] }
  0x15   :  { %1001 = vmatprep.subr.mxu0 %v822_v46  ;;  %974 = vmatmul.mubr.msk.f32.vlgmr.msra.gmra.mxu0 %vm123_vm0, %v1220_v15 }
  0x16   :  { %1002 = vmatpush3.msra.mxu0 %v822_v46  ;;  %976 = vmatprep.mubr.msk.f32.mxu0 %vm123_vm0, %v36_v26  ;;  %v476_v26 = vld [vmem:[%s1587_s5 + $0x48] sm:$0xff] }
  0x17   :  { %1003 = vmatprep.subr.mxu0 %v821_v47  ;;  %992 = vmatpush3.msra.mxu1 %v107_v45 }
  0x18   :  { %1004 = vmatpush3.msra.mxu0 %v821_v47  ;;  %993 = vmatprep.subr.mxu1 %v106_v48 }
  0x19   :  { %1005 = vmatprep.subr.mxu0 %v820_v49  ;;  %977 = vmatmul.mubr.msk.f32.gmra.mxu0 %vm123_vm0, %v37_v27  ;;  %v831_v27 = vld [vmem:[%s1587_s5 + $0x98] sm:$0xff] }
  0x1a   :  { %1006 = vmatpush3.msra.mxu0 %v820_v49  ;;  %994 = vmatpush3.msra.mxu1 %v106_v48 }
  0x1b   :  { %1007 = vmatprep.subr.mxu0 %v819_v50  ;;  %1023 = vmatprep.subr.mxu1 %v843_v51 }
  0x1c   :  { %1008 = vmatpush3.msra.mxu0 %v819_v50  ;;  %v827_v50 = vld [vmem:[%s1588_s4] ss:$0 sm:$0xff] }
  0x1d   :  { %1009 = vmatprep.subr.mxu0 %v818_v52 }
  0x1e   :  { %1010 = vmatpush3.msra.mxu0 %v818_v52 }
  0x1f   :  { %1011 = vmatprep.subr.mxu0 %v817_v53 }
  0x20   :  { %1012 = vmatpush3.msra.mxu0 %v817_v53 }
  0x21   :  { %1013 = vmatprep.subr.mxu0 %v816_v54 }
  0x22   :  { %1014 = vmatpush3.msra.mxu0 %v816_v54 }
  0x23   :  { %1015 = vmatprep.subr.mxu0 %v815_v55 }
  0x24   :  { %1016 = vmatpush3.msra.mxu0 %v815_v55 }
  0x25   :  { %1061 = vmatprep.subr.mxu0 %v482_v56 }
  0x7d   :  { %v1340_v57 = vpop.permute.xlu1 %84 }
  0x7e   :  { %v1342_v58 = vpop.permute.xlu0 %51  ;;  %v102_v59 = vmul.f32 %v1340_v57, %v1240_v23  ;;  %v833_v23 = vld [vmem:[%s1587_s5 + $0xa8] sm:$0xff] }
  0x7f   :  { %v69_v60 = vmul.f32 %v1342_v58, %v1266_v35  ;;  %v859_v35 = vld [vmem:[%s1587_s5 + $0x178] sm:$0xff] }
  0x80   :  { %1017 = vmatprep.mubr.msk.f32.mxu0 %vm123_vm0, %v102_v59 }
  0x81   :  { %995 = vmatprep.mubr.msk.f32.mxu1 %vm123_vm0, %v69_v60  ;;  %v1350_v61 = vpop.permute.xlu1 %89 }
  0x82   :  { %v1352_v62 = vpop.permute.xlu0 %56  ;;  %v103_v63 = vmul.f32 %v1350_v61, %v1270_v36  ;;  %v471_v36 = vld [vmem:[%s1587_s5 + $0x20] sm:$0xff] }
  0x83   :  { %v70_v0 = vmul.f32 %v1352_v62, %v1244_v24  ;;  %v477_v24 = vld [vmem:[%s1587_s5 + $0x50] sm:$0xff] }
  0x84   :  { %1018 = vmatmul.mubr.msk.f32.vlgmr.msra.gmra.mxu0 %vm123_vm0, %v103_v63 }
  0x85   :  { %996 = vmatmul.mubr.msk.f32.vlgmr.msra.gmra.mxu1 %vm123_vm0, %v70_v0  ;;  %v1366_v3 = vpop.permute.xlu1 %66  ;;  %1062 = vmatpush3.msra.mxu0 %v482_v56 }
  0x86   :  { %v1368_v4 = vpop.permute.xlu0 %61  ;;  %1024 = vmatpush3.msra.mxu1 %v843_v51  ;;  %v72_v6 = vmul.f32 %v1366_v3, %v1274_v37  ;;  %1063 = vmatprep.subr.mxu0 %v481_v2  ;;  %v470_v37 = vld [vmem:[%s1587_s5 + $0x18] sm:$0xff] }
  0x87   :  { %v71_v7 = vmul.f32 %v1368_v4, %v1281_v39  ;;  %1025 = vmatprep.subr.mxu1 %v842_v1  ;;  %1064 = vmatpush3.msra.mxu0 %v481_v2  ;;  %v468_v39 = vld [vmem:[%s1587_s5 + $0x8] sm:$0xff] }
  0x88   :  { %1026 = vmatpush3.msra.mxu1 %v842_v1  ;;  %1065 = vmatprep.subr.mxu0 %v480_v9 }
  0x89   :  { %998 = vmatprep.mubr.msk.f32.mxu1 %vm123_vm0, %v71_v7  ;;  %1027 = vmatprep.subr.mxu1 %v841_v5  ;;  %v1387_v12 = vpop.permute.xlu1 %99  ;;  %v858_v7 = vld [vmem:[%s1587_s5 + $0x170] sm:$0xff] }
  0x8a   :  { %v1389_v13 = vpop.permute.xlu0 %94  ;;  %999 = vmatmul.mubr.msk.f32.gmra.mxu1 %vm123_vm0, %v72_v6  ;;  %v105_v14 = vmul.f32 %v1387_v12, %v1285_v40  ;;  %1066 = vmatpush3.msra.mxu0 %v480_v9  ;;  %v467_v40 = vld [vmem:[%s1587_s5] sm:$0xff] }
  0x8b   :  { %v104_v15 = vmul.f32 %v1389_v13, %v1289_v41  ;;  %1028 = vmatpush3.msra.mxu1 %v841_v5  ;;  %1067 = vmatprep.subr.mxu0 %v479_v11 }
  0x8c   :  { %1029 = vmatprep.subr.mxu1 %v840_v10  ;;  %1068 = vmatpush3.msra.mxu0 %v479_v11 }
  0x8d   :  { %1020 = vmatprep.mubr.msk.f32.mxu0 %vm123_vm0, %v104_v15  ;;  %1030 = vmatpush3.msra.mxu1 %v840_v10 }
  0x8e   :  { %1021 = vmatmul.mubr.msk.f32.gmra.mxu0 %vm123_vm0, %v105_v14  ;;  %1031 = vmatprep.subr.mxu1 %v839_v16  ;;  %v857_v14 = vld [vmem:[%s1587_s5 + $0x168] sm:$0xff] }
  0x8f   :  { %1032 = vmatpush3.msra.mxu1 %v839_v16  ;;  %1069 = vmatprep.subr.mxu0 %v478_v18 }
  0x90   :  { %1033 = vmatprep.subr.mxu1 %v838_v17  ;;  %1070 = vmatpush3.msra.mxu0 %v478_v18 }
  0x91   :  { %1034 = vmatpush3.msra.mxu1 %v838_v17  ;;  %1071 = vmatprep.subr.mxu0 %v477_v24 }
  0x92   :  { %1035 = vmatprep.subr.mxu1 %v837_v19  ;;  %1072 = vmatpush3.msra.mxu0 %v477_v24  ;;  %v855_v24 = vld [vmem:[%s1587_s5 + $0x158] sm:$0xff] }
  0x93   :  { %1036 = vmatpush3.msra.mxu1 %v837_v19  ;;  %1073 = vmatprep.subr.mxu0 %v476_v26  ;;  %v856_v19 = vld [vmem:[%s1587_s5 + $0x160] sm:$0xff] }
  0x94   :  { %1037 = vmatprep.subr.mxu1 %v836_v20  ;;  %1074 = vmatpush3.msra.mxu0 %v476_v26 }
  0x95   :  { %1038 = vmatpush3.msra.mxu1 %v836_v20  ;;  %1075 = vmatprep.subr.mxu0 %v475_v28 }
  0x96   :  { %1039 = vmatprep.subr.mxu1 %v835_v21  ;;  %1076 = vmatpush3.msra.mxu0 %v475_v28 }
  0x97   :  { %1040 = vmatpush3.msra.mxu1 %v835_v21  ;;  %1077 = vmatprep.subr.mxu0 %v474_v30 }
  0x98   :  { %1041 = vmatprep.subr.mxu1 %v834_v22  ;;  %1078 = vmatpush3.msra.mxu0 %v474_v30  ;;  %v854_v30 = vld [vmem:[%s1587_s5 + $0x150] sm:$0xff] }
  0x99   :  { %1042 = vmatpush3.msra.mxu1 %v834_v22  ;;  %1079 = vmatprep.subr.mxu0 %v473_v32 }
  0x9a   :  { %1043 = vmatprep.subr.mxu1 %v833_v23  ;;  %1080 = vmatpush3.msra.mxu0 %v473_v32 }
  0x9b   :  { %1044 = vmatpush3.msra.mxu1 %v833_v23  ;;  %1081 = vmatprep.subr.mxu0 %v472_v34 }
  0x9c   :  { %1045 = vmatprep.subr.mxu1 %v832_v25  ;;  %1082 = vmatpush3.msra.mxu0 %v472_v34  ;;  %v852_v34 = vld [vmem:[%s1587_s5 + $0x140] sm:$0xff] }
  0x9d   :  { %1046 = vmatpush3.msra.mxu1 %v832_v25  ;;  %1083 = vmatprep.subr.mxu0 %v471_v36 }
  0x9e   :  { %1047 = vmatprep.subr.mxu1 %v831_v27  ;;  %1084 = vmatpush3.msra.mxu0 %v471_v36  ;;  %v849_v36 = vld [vmem:[%s1587_s5 + $0x128] sm:$0xff] }
  0x9f   :  { %1048 = vmatpush3.msra.mxu1 %v831_v27  ;;  %1085 = vmatprep.subr.mxu0 %v470_v37 }
  0xa0   :  { %1049 = vmatprep.subr.mxu1 %v830_v29  ;;  %1086 = vmatpush3.msra.mxu0 %v470_v37  ;;  %v847_v37 = vld [vmem:[%s1587_s5 + $0x118] sm:$0xff] }
  0xa1   :  { %1050 = vmatpush3.msra.mxu1 %v830_v29  ;;  %1087 = vmatprep.subr.mxu0 %v469_v38 }
  0xa2   :  { %1051 = vmatprep.subr.mxu1 %v829_v31  ;;  %1088 = vmatpush3.msra.mxu0 %v469_v38 }
  0xa3   :  { %1052 = vmatpush3.msra.mxu1 %v829_v31  ;;  %1089 = vmatprep.subr.mxu0 %v468_v39 }
  0xa4   :  { %1053 = vmatprep.subr.mxu1 %v828_v33  ;;  %1090 = vmatpush3.msra.mxu0 %v468_v39  ;;  %v846_v39 = vld [vmem:[%s1587_s5 + $0x110] sm:$0xff] }
  0xa5   :  { %1054 = vmatpush3.msra.mxu1 %v828_v33  ;;  %1091 = vmatprep.subr.mxu0 %v467_v40 }
  0xa6   :  { %1099 = vmatprep.subr.mxu1 %v859_v35  ;;  %1092 = vmatpush3.msra.mxu0 %v467_v40  ;;  %v845_v40 = vld [vmem:[%s1587_s5 + $0x108] sm:$0xff] }
  0xd5   :  { %v975_v41 = vpop.f32.mrf.mxu0 }
  0xd7   :  { %v202_v42 = vpop.f32.mrf.mxu0 }
  0xd9   :  { %v978_v43 = vpop.f32.mrf.mxu0 }
  0xdb   :  { %v212_v44 = vpop.f32.mrf.mxu0 }
 0x144   :  { %v1019_v46 = vpop.f32.mrf.mxu0 }
 0x145   :  { %v997_v45 = vpop.f32.mrf.mxu1 }
 0x146   :  { %v305_v47 = vadd.f32 %v997_v45, %v975_v41  ;;  %v405_v52 = vpop.f32.mrf.mxu0 }
 0x147   :  { %v299_v48 = vpop.f32.mrf.mxu1 }
 0x148   :  { %v425_v49 = vadd.f32 %v1019_v46, %v305_v47  ;;  %v300_v51 = vadd.f32 %v299_v48, %v202_v42 }
 0x14a   :  { %v424_v53 = vadd.f32 %v405_v52, %v300_v51  ;;  %v1000_v54 = vpop.f32.mrf.mxu1  ;;  %v436_v55 = vadd.f32 %v827_v50, %v425_v49 }
 0x14b   :  { %v315_v60 = vadd.f32 %v1000_v54, %v978_v43  ;;  %v844_v43 = vld [vmem:[%s1587_s5 + $0x100] sm:$0xff] }
 0x14c   :  { %v435_v56 = vadd.f32 %v827_v50, %v424_v53  ;;  %v309_v59 = vpop.f32.mrf.mxu1  ;;  %v1478_v1 = vmax.f32 %v436_v55, 0.0 }
 0x14d   :  { %v310_v2 = vadd.f32 %v309_v59, %v212_v44 }
 0x14e   :  { %v1476_v63 = vmax.f32 %v435_v56, 0.0  ;;  %v1022_v0 = vpop.f32.mrf.mxu0  ;;  %v456_v15 = vrot.slane %v1478_v1, 1  ;;  %v444_v20 = vrot.slane %v1478_v1, 7 }
 0x14f   :  { %v427_v5 = vadd.f32 %v1022_v0, %v315_v60 }
 0x150   :  { %v415_v6 = vpop.f32.mrf.mxu0  ;;  %1055 = vmatprep.mubr.f32.mxu1 %v1476_v63  ;;  %v455_v9 = vrot.slane %v1476_v63, 1  ;;  %v443_v16 = vrot.slane %v1476_v63, 7 }
 0x151   :  { %v438_v10 = vadd.f32 %v827_v50, %v427_v5  ;;  %v426_v11 = vadd.f32 %v415_v6, %v310_v2  ;;  %1056 = vmatmul.mubr.f32.vlgmr.msra.gmra.mxu1 %v1478_v1 }
 0x152   :  { %1100 = vmatpush3.msra.mxu1 %v859_v35  ;;  %v461_v23 = vsel %vm77_vm1, %v455_v9, %v456_v15  ;;  %v449_v25 = vsel %vm44_vm2, %v443_v16, %v444_v20  ;;  %v850_v35 = vld [vmem:[%s1587_s5 + $0x130] sm:$0xff] }
 0x153   :  { %v1491_v17 = vmax.f32 %v438_v10, 0.0  ;;  %v437_v18 = vadd.f32 %v827_v50, %v426_v11  ;;  %1101 = vmatprep.subr.mxu1 %v858_v7  ;;  %v463_v28 = vmul.f32 %v461_v23, %v1340_v57  ;;  %v452_v32 = vmul.f32 %v449_v25, %v1352_v62  ;;  %v853_v57 = vld [vmem:[%s1587_s5 + $0x148] sm:$0xff] }
 0x154   :  { %1102 = vmatpush3.msra.mxu1 %v858_v7 }
 0x155   :  { %v446_v21 = vrot.slane %v1491_v17, 7  ;;  %v441_v22 = vmax.f32 %v437_v18, 0.0  ;;  %1103 = vmatprep.subr.mxu1 %v857_v14  ;;  %v458_v41 = vrot.slane %v1491_v17, 1 }
 0x156   :  { %1104 = vmatpush3.msra.mxu1 %v857_v14 }
 0x157   :  { %v445_v26 = vrot.slane %v441_v22, 7  ;;  %1105 = vmatprep.subr.mxu1 %v856_v19  ;;  %1058 = vmatprep.mubr.f32.mxu1 %v441_v22  ;;  %v450_v27 = vsel %vm44_vm2, %v446_v21, %v443_v16  ;;  %v457_v38 = vrot.slane %v441_v22, 1  ;;  %v462_v47 = vsel %vm77_vm1, %v458_v41, %v455_v9 }
 0x158   :  { %1106 = vmatpush3.msra.mxu1 %v856_v19  ;;  %v451_v29 = vmul.f32 %v450_v27, %v1342_v58  ;;  %v466_v48 = vmul.f32 %v462_v47, %v1387_v12 }
 0x159   :  { %1059 = vmatmul.mubr.f32.gmra.mxu1 %v1491_v17  ;;  %1107 = vmatprep.subr.mxu1 %v855_v24  ;;  %v448_v31 = vsel %vm44_vm2, %v444_v20, %v445_v26  ;;  %v447_v58 = vsel %vm44_vm2, %v445_v26, %v446_v21  ;;  %v460_v42 = vsel %vm77_vm1, %v456_v15, %v457_v38 }
 0x15a   :  { %1108 = vmatpush3.msra.mxu1 %v855_v24  ;;  %1131 = vmatprep.mubr.f32.mxu1 %v463_v28  ;;  %v453_v33 = vmul.f32 %v448_v31, %v1368_v4  ;;  %v454_v62 = vmul.f32 %v447_v58, %v1366_v3  ;;  %v851_v4 = vld [vmem:[%s1587_s5 + $0x138] sm:$0xff]  ;;  %v848_v3 = vld [vmem:[%s1587_s5 + $0x120] sm:$0xff]  ;;  %v459_v44 = vsel %vm77_vm1, %v457_v38, %v458_v41 }
 0x15b   :  { %1093 = vmatprep.mubr.f32.mxu0 %v451_v29  ;;  %1109 = vmatprep.subr.mxu1 %v854_v30  ;;  %v464_v45 = vmul.f32 %v460_v42, %v1350_v61  ;;  %v465_v46 = vmul.f32 %v459_v44, %v1389_v13  ;;  %v860_v13 = vld [vmem:[%s1589_s6] ss:$0 sm:$0xff] }
 0x15c   :  { %1094 = vmatmul.mubr.f32.vlgmr.msra.gmra.mxu0 %v452_v32  ;;  %1110 = vmatpush3.msra.mxu1 %v854_v30 }
 0x15d   :  { %1096 = vmatprep.mubr.f32.mxu0 %v453_v33  ;;  %1111 = vmatprep.subr.mxu1 %v853_v57 }
 0x15e   :  { %1112 = vmatpush3.msra.mxu1 %v853_v57 }
 0x15f   :  { %1113 = vmatprep.subr.mxu1 %v852_v34 }
 0x160   :  { %1097 = vmatmul.mubr.f32.gmra.mxu0 %v454_v62  ;;  %1114 = vmatpush3.msra.mxu1 %v852_v34 }
 0x161   :  { %1115 = vmatprep.subr.mxu1 %v851_v4 }
 0x162   :  { %1116 = vmatpush3.msra.mxu1 %v851_v4 }
 0x163   :  { %1117 = vmatprep.subr.mxu1 %v850_v35 }
 0x164   :  { %1118 = vmatpush3.msra.mxu1 %v850_v35 }
 0x165   :  { %1119 = vmatprep.subr.mxu1 %v849_v36 }
 0x166   :  { %1120 = vmatpush3.msra.mxu1 %v849_v36 }
 0x167   :  { %1121 = vmatprep.subr.mxu1 %v848_v3 }
 0x168   :  { %1122 = vmatpush3.msra.mxu1 %v848_v3 }
 0x169   :  { %1123 = vmatprep.subr.mxu1 %v847_v37 }
 0x16a   :  { %1124 = vmatpush3.msra.mxu1 %v847_v37 }
 0x16b   :  { %1125 = vmatprep.subr.mxu1 %v846_v39 }
 0x16c   :  { %1126 = vmatpush3.msra.mxu1 %v846_v39 }
 0x16d   :  { %1127 = vmatprep.subr.mxu1 %v845_v40 }
 0x16e   :  { %1128 = vmatpush3.msra.mxu1 %v845_v40 }
 0x16f   :  { %1129 = vmatprep.subr.mxu1 %v844_v43 }
 0x170   :  { %1130 = vmatpush3.msra.mxu1 %v844_v43 }
 0x171   :  { %1132 = vmatmul.mubr.f32.vlgmr.msra.gmra.mxu1 %v464_v45 }
 0x172   :  { %1134 = vmatprep.mubr.f32.mxu1 %v465_v46 }
 0x175   :  { %1135 = vmatmul.mubr.f32.gmra.mxu1 %v466_v48 }
 0x211   :  { %v1057_v49 = vpop.f32.mrf.mxu1 }
 0x213   :  { %v566_v51 = vpop.f32.mrf.mxu1 }
 0x219   :  { %v1060_v52 = vpop.f32.mrf.mxu1 }
 0x21b   :  { %v576_v54 = vpop.f32.mrf.mxu1 }
 0x21c   :  { %v1095_v50 = vpop.f32.mrf.mxu0 }
 0x21d   :  { %v657_v55 = vadd.f32 %v1095_v50, %v1057_v49 }
 0x21e   :  { %v651_v53 = vpop.f32.mrf.mxu0 }
 0x21f   :  { %v652_v8 = vadd.f32 %v651_v53, %v566_v51 }
 0x220   :  { %v1098_v61 = vpop.f32.mrf.mxu0 }
 0x221   :  { %v667_v0 = vadd.f32 %v1098_v61, %v1060_v52 }
 0x222   :  { %v661_v60 = vpop.f32.mrf.mxu0 }
 0x223   :  { %v662_v5 = vadd.f32 %v661_v60, %v576_v54 }
 0x231   :  { %v1133_v56 = vpop.f32.mrf.mxu1 }
 0x232   :  { %v773_v59 = vadd.f32 %v1133_v56, %v657_v55 }
 0x233   :  { %v753_v63 = vpop.f32.mrf.mxu1 }
 0x234   :  { %v784_v12 = vadd.f32 %v860_v13, %v773_v59  ;;  %v772_v1 = vadd.f32 %v753_v63, %v652_v8 }
 0x235   :  { %v1136_v2 = vpop.f32.mrf.mxu1 }
 0x236   :  { %v788_v6 = vmax.f32 %v784_v12, 0.0  ;;  %v783_v7 = vadd.f32 %v860_v13, %v772_v1  ;;  %v775_v9 = vadd.f32 %v1136_v2, %v667_v0 }
 0x237   :  { %v763_v10 = vpop.f32.mrf.mxu1 }
 0x238   :  { %792 = vst [vmem:[%s1590_s7 + $0x8] sm:$0xff] %v788_v6  ;;  %v787_v11 = vmax.f32 %v783_v7, 0.0  ;;  %v786_v14 = vadd.f32 %v860_v13, %v775_v9  ;;  %v774_v15 = vadd.f32 %v763_v10, %v662_v5 }
 0x23a   :  { %791 = vst [vmem:[%s1590_s7] sm:$0xff] %v787_v11  ;;  %v790_v16 = vmax.f32 %v786_v14, 0.0  ;;  %v785_v17 = vadd.f32 %v860_v13, %v774_v15 }
 0x23c   :  { %794 = vst [vmem:[%s1590_s7 + $0x18] sm:$0xff] %v790_v16  ;;  %v789_v18 = vmax.f32 %v785_v17, 0.0 }
 0x23e   :  { %793 = vst [vmem:[%s1590_s7 + $0x10] sm:$0xff] %v789_v18 }

</bundles_post_ra>
